<compile_context>
chip_gen: v7x
topology: tpu7x:2x2x1
jax: 0.10.0
libtpu: 0.0.40
codegen_flags: <defaults>
</compile_context>

<pallas_src>
import jax
import jax.numpy as jnp
import numpy as np
from jax import lax
from jax.experimental import pallas as pl
from jax.experimental.pallas import tpu as pltpu


def _adad_kernel(wk_ref, bnb_ref, chs_ref, mask_ref, pr_ref, o_ref):
    """One (spatial-tile, batch) grid step.

    wk_ref   : (KK, KK, C)   per-tap weight_net conv weights, BN scale folded in
    bnb_ref  : (KK, 1)       folded BN bias
    chs_ref  : (1, C, 1)     channel_net output for this batch element
    mask_ref : (KK, T)       1.0 where the tap lies inside the image (zero padding)
    pr_ref   : (1, KK, C, T) reflect-padded 3x3 patches, KK-major
    o_ref    : (1, C, T)     output tile (lane-dense on the spatial axis)
    """
    KK = wk_ref.shape[0]
    C = chs_ref.shape[1]
    T = o_ref.shape[2]

    # weight_net 3x3/stride conv (+ folded BN scale) as 9 per-tap MXU matmuls on the
    # reflect-padded patches.  The zero-padding validity mask is constant over the
    # contracted C axis, so it commutes with the contraction and is applied to the
    # small (KK, T) output instead of the (C, T) RHS.
    # (At larger C, pass precision=lax.Precision.HIGHEST here if the bf16-pass MXU
    #  default ever gets marginal vs. a 1e-4 tolerance; M=9 makes it nearly free.)
    acc = None
    for k in range(KK):
        part = jnp.dot(wk_ref[k], pr_ref[0, k],
                       preferred_element_type=jnp.float32)
        part = part * mask_ref[k:k + 1, :]                        # (KK, T)
        acc = part if acc is None else acc + part
    logits = acc + bnb_ref[...]                                   # (KK, T)

    # Hoist the (C,1)->(C,T) broadcast of chs out of the unrolled tap loops.
    chs_b = jnp.broadcast_to(chs_ref[0], (C, T))                  # (C, T)

    # Online softmax over the KK taps of l[c, k, p] = chs[c] * logits[k, p].
    # max_k(chs * logits) == chs * max(logits) if chs >= 0 else chs * min(logits).
    lmax = jnp.max(logits, axis=0, keepdims=True)                 # (1, T)
    lmin = jnp.min(logits, axis=0, keepdims=True)                 # (1, T)
    m = jnp.where(chs_b >= 0.0, chs_b * lmax, chs_b * lmin)       # (C, T)

    ssum = jnp.zeros((C, T), jnp.float32)
    oacc = jnp.zeros((C, T), jnp.float32)
    for k in range(KK):
        e = jnp.exp(chs_b * logits[k:k + 1, :] - m)               # (C, T)
        ssum = ssum + e
        oacc = oacc + e * pr_ref[0, k]                            # weighted sum of taps

    # EUP approximate reciprocal + one Newton-Raphson step (ssum in [1, 9], so the
    # refinement keeps relative error ~1e-7, well inside the 1e-4 tolerance).
    r = pl.reciprocal(ssum, approx=True)
    r = r * (2.0 - ssum * r)
    o_ref[0] = (oacc * r).astype(o_ref.dtype)


def _extract_patches(xp, K, stride, oh, ow, tap_axis):
    """xp: (B, C, Hp, Wp) padded input -> 3x3 patches stacked on `tap_axis`
    with tap index kk = ki*K + kj."""
    slices = []
    for ki in range(K):
        for kj in range(K):
            slices.append(xp[:, :, ki:ki + (oh - 1) * stride + 1:stride,
                              kj:kj + (ow - 1) * stride + 1:stride])
    return jnp.stack(slices, axis=tap_axis)


def _vmem_budget():
    """Generation-aware (stream budget, vmem_limit_bytes)."""
    cap = 64 << 20
    try:
        cap = int(getattr(pltpu.get_tpu_info(), "vmem_capacity_bytes", cap))
    except Exception:
        pass
    if cap >= 100 * (1 << 20):
        # v5e / v6e: 128 MiB physical VMEM — allow larger tiles for big C.
        return 20 << 20, 64 << 20
    # v7x: 64 MiB per TensorCore — stay conservative.
    return 8 << 20, 32 << 20


def _spatial_tile(ohw, c, kk, budget_bytes):
    """Lane-dense spatial tile size.

    Accounts for the double-buffered pr/out/mask streams plus the live (C, T) /
    (KK, T) elementwise temporaries (chs_b, m, e, ssum, oacc, logits) which are
    not double-buffered but do occupy VMEM / spill scratch.
    """
    stream_per_lane = 4 * 2 * (kk * c + c + kk)       # f32, double-buffered
    temp_per_lane = 4 * (5 * c + 2 * kk)              # live elementwise temporaries
    per_lane = stream_per_lane + temp_per_lane
    t = budget_bytes // per_lane
    t = max(128, min(2048, (t // 128) * 128))         # lane-dense multiple of 128
    if ohw <= t:
        return int(ohw)                               # single full-extent tile
    return int(t)


def adad_conv_forward(x, params, kernel_size=3, stride=2):
    B, C, H, W = x.shape
    K = kernel_size
    KK = K * K
    pad = (K - 1) // 2
    oh = (H - 1) // stride + 1
    ow = (W - 1) // stride + 1
    OHW = oh * ow

    eps = 1e-5
    inv_std = 1.0 / jnp.sqrt(params['bn_var'] + eps)
    bn_scale = params['bn_gamma'] * inv_std                            # (KK,)
    bn_bias = (params['bn_beta'] -
               params['bn_mean'] * params['bn_gamma'] * inv_std).reshape(KK, 1)

    # Per-tap conv weights with BN scale folded in: wk[k, o, c] = w_conv[o, c, ki, kj] * s[o].
    wk = jnp.transpose(params['w_conv'], (2, 3, 0, 1)).reshape(KK, KK, C)
    wk = wk * bn_scale.reshape(1, KK, 1)

    # channel_net hoisted to plain JAX: GAP -> 1x1 conv -> ReLU -> 1x1 conv.
    gap = x.mean(axis=(2, 3))                                          # (B, C)
    hid = jnp.maximum(gap @ params['ch_w1'].T, 0.0)                    # (B, C//4)
    chs = (hid @ params['ch_w2'].T).reshape(B, C, 1)                   # (B, C, 1)

    # Reflect-padded 3x3 patches, KK-major: (B, KK, C, OH*OW) — the only large
    # HBM stream the kernel reads.
    x_refl = jnp.pad(x, ((0, 0), (0, 0), (pad, pad), (pad, pad)), mode='reflect')
    pr = _extract_patches(x_refl, K, stride, oh, ow,
                          tap_axis=1).reshape(B, KK, C, OHW)

    # Per-tap validity mask: zero-padded im2col == reflect patches * mask.
    oy = np.arange(oh) * stride - pad
    ox = np.arange(ow) * stride - pad
    rows = []
    for ki in range(K):
        vy = (oy + ki >= 0) & (oy + ki < H)
        for kj in range(K):
            vx = (ox + kj >= 0) & (ox + kj < W)
            rows.append(np.outer(vy, vx).reshape(-1))
    mask = jnp.asarray(np.stack(rows), dtype=x.dtype)                  # (KK, OHW)

    budget, vmem_limit = _vmem_budget()
    T = _spatial_tile(OHW, C, KK, budget)
    NS = pl.cdiv(OHW, T)

    # Grid: spatial tiles outer, batch inner (mask block index is constant across
    # the inner batch loop -> revisit elision; spatial axis shards the megacore).
    out = pl.pallas_call(
        _adad_kernel,
        out_shape=jax.ShapeDtypeStruct((B, C, OHW), x.dtype),
        grid_spec=pltpu.PrefetchScalarGridSpec(
            num_scalar_prefetch=0,
            grid=(NS, B),
            in_specs=[
                pl.BlockSpec((KK, KK, C), lambda s, b: (0, 0, 0)),
                pl.BlockSpec((KK, 1), lambda s, b: (0, 0)),
                pl.BlockSpec((1, C, 1), lambda s, b: (b, 0, 0)),
                pl.BlockSpec((KK, T), lambda s, b: (0, s)),
                pl.BlockSpec((1, KK, C, T), lambda s, b: (b, 0, 0, s)),
            ],
            out_specs=pl.BlockSpec((1, C, T), lambda s, b: (b, 0, s)),
        ),
        compiler_params=pltpu.CompilerParams(
            dimension_semantics=("parallel", "parallel"),
            vmem_limit_bytes=vmem_limit),
    )(wk, bn_bias, chs, mask, pr)

    return out.reshape(B, C, oh, ow)


def adad_conv_reference(x, params, kernel_size=3, stride=2):
    """Pure-JAX reference following the PyTorch forward line by line."""
    B, C, H, W = x.shape
    K = kernel_size
    KK = K * K
    pad = (K - 1) // 2
    oh = (H - 1) // stride + 1
    ow = (W - 1) // stride + 1
    eps = 1e-5

    conv = lax.conv_general_dilated(
        x, params['w_conv'], (stride, stride), [(pad, pad), (pad, pad)],
        dimension_numbers=('NCHW', 'OIHW', 'NCHW'))
    bn = (conv - params['bn_mean'][None, :, None, None]) / jnp.sqrt(
        params['bn_var'] + eps)[None, :, None, None]
    bn = bn * params['bn_gamma'][None, :, None, None] + \
        params['bn_beta'][None, :, None, None]

    weight = jnp.broadcast_to(bn.reshape(B, 1, 1, KK, oh, ow),
                              (B, 1, C, KK, oh, ow))
    gap = x.mean(axis=(2, 3))                                  # (B, C)
    hid = jnp.maximum(gap @ params['ch_w1'].T, 0.0)            # (B, C//4)
    chs = hid @ params['ch_w2'].T                              # (B, C)
    weight = weight * chs.reshape(B, 1, C, 1, 1, 1)
    weight = jnp.transpose(weight, (0, 1, 2, 4, 5, 3))         # (B,1,C,oh,ow,KK)
    weight = jax.nn.softmax(weight, axis=-1)
    weight = weight.reshape(B, 1, C, oh, ow, K, K)

    x_refl = jnp.pad(x, ((0, 0), (0, 0), (pad, pad), (pad, pad)), mode='reflect')
    patches = _extract_patches(x_refl, K, stride, oh, ow, tap_axis=2)  # (B,C,KK,oh,ow)
    patches = jnp.transpose(patches.reshape(B, C, K, K, oh, ow),
                            (0, 1, 4, 5, 2, 3))                # (B,C,oh,ow,K,K)
    res = (weight[:, 0] * patches).sum(axis=(-1, -2))          # (B,C,oh,ow)
    return res


if __name__ == "__main__":
    key = jax.random.PRNGKey(0)
    B, C, H, W = 2, 8, 16, 16
    K = 3
    KK = K * K
    C4 = C // 4

    ks = jax.random.split(key, 8)
    x = jax.random.normal(ks[0], (B, C, H, W), jnp.float32)
    params = dict(
        w_conv=0.1 * jax.random.normal(ks[1], (KK, C, K, K), jnp.float32),
        bn_gamma=1.0 + 0.1 * jax.random.normal(ks[2], (KK,), jnp.float32),
        bn_beta=0.1 * jax.random.normal(ks[3], (KK,), jnp.float32),
        bn_mean=0.05 * jax.random.normal(ks[4], (KK,), jnp.float32),
        bn_var=1.0 + 0.1 * jnp.abs(jax.random.normal(ks[5], (KK,), jnp.float32)),
        ch_w1=0.2 * jax.random.normal(ks[6], (C4, C), jnp.float32),
        ch_w2=0.2 * jax.random.normal(ks[7], (C, C4), jnp.float32),
    )

    out = adad_conv_forward(x, params, kernel_size=K, stride=2)
    out = jax.block_until_ready(out)

    ref = adad_conv_reference(x, params, kernel_size=K, stride=2)
    np.testing.assert_allclose(np.asarray(out), np.asarray(ref),
                               rtol=1e-4, atol=1e-4)
    print("KERNEL_OK")
</pallas_src>

<mosaic_0001>
module attributes {stable_mosaic.version = 11 : i64} {
  func.func @_adad_kernel(%arg0: i32, %arg1: i32, %arg2: memref<9x9x8xf32, #tpu.memory_space<vmem>>, %arg3: memref<9x1xf32, #tpu.memory_space<vmem>>, %arg4: memref<1x8x1xf32, #tpu.memory_space<vmem>>, %arg5: memref<9x64xf32, #tpu.memory_space<vmem>>, %arg6: memref<1x9x8x64xf32, #tpu.memory_space<vmem>>, %arg7: memref<1x8x64xf32, #tpu.memory_space<vmem>>) attributes {dimension_semantics = [#tpu.dimension_semantics<parallel>, #tpu.dimension_semantics<parallel>], iteration_bounds = array<i64: 1, 2>, scalar_prefetch = 0 : i64, scratch_operands = 0 : i64, tpu.core_type = #tpu.core_type<tc>, window_params = [{pipeline_mode = #tpu.pipeline_mode<synchronous>, transform_indices = @transform_0, window_bounds = array<i64: 9, 9, 8>}, {pipeline_mode = #tpu.pipeline_mode<synchronous>, transform_indices = @transform_1, window_bounds = array<i64: 9, 1>}, {transform_indices = @transform_2, window_bounds = array<i64: 1, 8, 1>}, {transform_indices = @transform_3, window_bounds = array<i64: 9, 64>}, {transform_indices = @transform_4, window_bounds = array<i64: 1, 9, 8, 64>}, {transform_indices = @transform_5, window_bounds = array<i64: 1, 8, 64>}]} {
    %c0 = arith.constant 0 : index
    %c0_0 = arith.constant 0 : index
    %c0_1 = arith.constant 0 : index
    %0 = vector.load %arg2[%c0, %c0_0, %c0_1] : memref<9x9x8xf32, #tpu.memory_space<vmem>>, vector<1x9x8xf32>
    %1 = vector.shape_cast %0 : vector<1x9x8xf32> to vector<9x8xf32>
    %c0_2 = arith.constant 0 : index
    %c0_3 = arith.constant 0 : index
    %c0_4 = arith.constant 0 : index
    %c0_5 = arith.constant 0 : index
    %2 = vector.load %arg6[%c0_2, %c0_3, %c0_4, %c0_5] : memref<1x9x8x64xf32, #tpu.memory_space<vmem>>, vector<1x1x8x64xf32>
    %3 = vector.shape_cast %2 : vector<1x1x8x64xf32> to vector<8x64xf32>
    %cst = arith.constant dense<0.000000e+00> : vector<9x64xf32>
    %4 = tpu.matmul %1, %3, %cst {dimension_numbers = #tpu.dot_dimension_numbers<[1], [0], [0], [1], [0, 0, 1, 1], [], []>} : vector<9x8xf32>, vector<8x64xf32>, vector<9x64xf32> -> vector<9x64xf32>
    %c0_6 = arith.constant 0 : index
    %c0_7 = arith.constant 0 : index
    %5 = vector.load %arg5[%c0_6, %c0_7] : memref<9x64xf32, #tpu.memory_space<vmem>>, vector<1x64xf32>
    %6 = vector.broadcast %5 : vector<1x64xf32> to vector<9x64xf32>
    %7 = arith.mulf %4, %6 : vector<9x64xf32>
    %c1 = arith.constant 1 : index
    %c0_8 = arith.constant 0 : index
    %c0_9 = arith.constant 0 : index
    %8 = vector.load %arg2[%c1, %c0_8, %c0_9] : memref<9x9x8xf32, #tpu.memory_space<vmem>>, vector<1x9x8xf32>
    %9 = vector.shape_cast %8 : vector<1x9x8xf32> to vector<9x8xf32>
    %c0_10 = arith.constant 0 : index
    %c1_11 = arith.constant 1 : index
    %c0_12 = arith.constant 0 : index
    %c0_13 = arith.constant 0 : index
    %10 = vector.load %arg6[%c0_10, %c1_11, %c0_12, %c0_13] : memref<1x9x8x64xf32, #tpu.memory_space<vmem>>, vector<1x1x8x64xf32>
    %11 = vector.shape_cast %10 : vector<1x1x8x64xf32> to vector<8x64xf32>
    %cst_14 = arith.constant dense<0.000000e+00> : vector<9x64xf32>
    %12 = tpu.matmul %9, %11, %cst_14 {dimension_numbers = #tpu.dot_dimension_numbers<[1], [0], [0], [1], [0, 0, 1, 1], [], []>} : vector<9x8xf32>, vector<8x64xf32>, vector<9x64xf32> -> vector<9x64xf32>
    %c1_15 = arith.constant 1 : index
    %c0_16 = arith.constant 0 : index
    %13 = vector.load %arg5[%c1_15, %c0_16] : memref<9x64xf32, #tpu.memory_space<vmem>>, vector<1x64xf32>
    %14 = vector.broadcast %13 : vector<1x64xf32> to vector<9x64xf32>
    %15 = arith.mulf %12, %14 : vector<9x64xf32>
    %16 = arith.addf %7, %15 : vector<9x64xf32>
    %c2 = arith.constant 2 : index
    %c0_17 = arith.constant 0 : index
    %c0_18 = arith.constant 0 : index
    %17 = vector.load %arg2[%c2, %c0_17, %c0_18] : memref<9x9x8xf32, #tpu.memory_space<vmem>>, vector<1x9x8xf32>
    %18 = vector.shape_cast %17 : vector<1x9x8xf32> to vector<9x8xf32>
    %c0_19 = arith.constant 0 : index
    %c2_20 = arith.constant 2 : index
    %c0_21 = arith.constant 0 : index
    %c0_22 = arith.constant 0 : index
    %19 = vector.load %arg6[%c0_19, %c2_20, %c0_21, %c0_22] : memref<1x9x8x64xf32, #tpu.memory_space<vmem>>, vector<1x1x8x64xf32>
    %20 = vector.shape_cast %19 : vector<1x1x8x64xf32> to vector<8x64xf32>
    %cst_23 = arith.constant dense<0.000000e+00> : vector<9x64xf32>
    %21 = tpu.matmul %18, %20, %cst_23 {dimension_numbers = #tpu.dot_dimension_numbers<[1], [0], [0], [1], [0, 0, 1, 1], [], []>} : vector<9x8xf32>, vector<8x64xf32>, vector<9x64xf32> -> vector<9x64xf32>
    %c2_24 = arith.constant 2 : index
    %c0_25 = arith.constant 0 : index
    %22 = vector.load %arg5[%c2_24, %c0_25] : memref<9x64xf32, #tpu.memory_space<vmem>>, vector<1x64xf32>
    %23 = vector.broadcast %22 : vector<1x64xf32> to vector<9x64xf32>
    %24 = arith.mulf %21, %23 : vector<9x64xf32>
    %25 = arith.addf %16, %24 : vector<9x64xf32>
    %c3 = arith.constant 3 : index
    %c0_26 = arith.constant 0 : index
    %c0_27 = arith.constant 0 : index
    %26 = vector.load %arg2[%c3, %c0_26, %c0_27] : memref<9x9x8xf32, #tpu.memory_space<vmem>>, vector<1x9x8xf32>
    %27 = vector.shape_cast %26 : vector<1x9x8xf32> to vector<9x8xf32>
    %c0_28 = arith.constant 0 : index
    %c3_29 = arith.constant 3 : index
    %c0_30 = arith.constant 0 : index
    %c0_31 = arith.constant 0 : index
    %28 = vector.load %arg6[%c0_28, %c3_29, %c0_30, %c0_31] : memref<1x9x8x64xf32, #tpu.memory_space<vmem>>, vector<1x1x8x64xf32>
    %29 = vector.shape_cast %28 : vector<1x1x8x64xf32> to vector<8x64xf32>
    %cst_32 = arith.constant dense<0.000000e+00> : vector<9x64xf32>
    %30 = tpu.matmul %27, %29, %cst_32 {dimension_numbers = #tpu.dot_dimension_numbers<[1], [0], [0], [1], [0, 0, 1, 1], [], []>} : vector<9x8xf32>, vector<8x64xf32>, vector<9x64xf32> -> vector<9x64xf32>
    %c3_33 = arith.constant 3 : index
    %c0_34 = arith.constant 0 : index
    %31 = vector.load %arg5[%c3_33, %c0_34] : memref<9x64xf32, #tpu.memory_space<vmem>>, vector<1x64xf32>
    %32 = vector.broadcast %31 : vector<1x64xf32> to vector<9x64xf32>
    %33 = arith.mulf %30, %32 : vector<9x64xf32>
    %34 = arith.addf %25, %33 : vector<9x64xf32>
    %c4 = arith.constant 4 : index
    %c0_35 = arith.constant 0 : index
    %c0_36 = arith.constant 0 : index
    %35 = vector.load %arg2[%c4, %c0_35, %c0_36] : memref<9x9x8xf32, #tpu.memory_space<vmem>>, vector<1x9x8xf32>
    %36 = vector.shape_cast %35 : vector<1x9x8xf32> to vector<9x8xf32>
    %c0_37 = arith.constant 0 : index
    %c4_38 = arith.constant 4 : index
    %c0_39 = arith.constant 0 : index
    %c0_40 = arith.constant 0 : index
    %37 = vector.load %arg6[%c0_37, %c4_38, %c0_39, %c0_40] : memref<1x9x8x64xf32, #tpu.memory_space<vmem>>, vector<1x1x8x64xf32>
    %38 = vector.shape_cast %37 : vector<1x1x8x64xf32> to vector<8x64xf32>
    %cst_41 = arith.constant dense<0.000000e+00> : vector<9x64xf32>
    %39 = tpu.matmul %36, %38, %cst_41 {dimension_numbers = #tpu.dot_dimension_numbers<[1], [0], [0], [1], [0, 0, 1, 1], [], []>} : vector<9x8xf32>, vector<8x64xf32>, vector<9x64xf32> -> vector<9x64xf32>
    %c4_42 = arith.constant 4 : index
    %c0_43 = arith.constant 0 : index
    %40 = vector.load %arg5[%c4_42, %c0_43] : memref<9x64xf32, #tpu.memory_space<vmem>>, vector<1x64xf32>
    %41 = vector.broadcast %40 : vector<1x64xf32> to vector<9x64xf32>
    %42 = arith.mulf %39, %41 : vector<9x64xf32>
    %43 = arith.addf %34, %42 : vector<9x64xf32>
    %c5 = arith.constant 5 : index
    %c0_44 = arith.constant 0 : index
    %c0_45 = arith.constant 0 : index
    %44 = vector.load %arg2[%c5, %c0_44, %c0_45] : memref<9x9x8xf32, #tpu.memory_space<vmem>>, vector<1x9x8xf32>
    %45 = vector.shape_cast %44 : vector<1x9x8xf32> to vector<9x8xf32>
    %c0_46 = arith.constant 0 : index
    %c5_47 = arith.constant 5 : index
    %c0_48 = arith.constant 0 : index
    %c0_49 = arith.constant 0 : index
    %46 = vector.load %arg6[%c0_46, %c5_47, %c0_48, %c0_49] : memref<1x9x8x64xf32, #tpu.memory_space<vmem>>, vector<1x1x8x64xf32>
    %47 = vector.shape_cast %46 : vector<1x1x8x64xf32> to vector<8x64xf32>
    %cst_50 = arith.constant dense<0.000000e+00> : vector<9x64xf32>
    %48 = tpu.matmul %45, %47, %cst_50 {dimension_numbers = #tpu.dot_dimension_numbers<[1], [0], [0], [1], [0, 0, 1, 1], [], []>} : vector<9x8xf32>, vector<8x64xf32>, vector<9x64xf32> -> vector<9x64xf32>
    %c5_51 = arith.constant 5 : index
    %c0_52 = arith.constant 0 : index
    %49 = vector.load %arg5[%c5_51, %c0_52] : memref<9x64xf32, #tpu.memory_space<vmem>>, vector<1x64xf32>
    %50 = vector.broadcast %49 : vector<1x64xf32> to vector<9x64xf32>
    %51 = arith.mulf %48, %50 : vector<9x64xf32>
    %52 = arith.addf %43, %51 : vector<9x64xf32>
    %c6 = arith.constant 6 : index
    %c0_53 = arith.constant 0 : index
    %c0_54 = arith.constant 0 : index
    %53 = vector.load %arg2[%c6, %c0_53, %c0_54] : memref<9x9x8xf32, #tpu.memory_space<vmem>>, vector<1x9x8xf32>
    %54 = vector.shape_cast %53 : vector<1x9x8xf32> to vector<9x8xf32>
    %c0_55 = arith.constant 0 : index
    %c6_56 = arith.constant 6 : index
    %c0_57 = arith.constant 0 : index
    %c0_58 = arith.constant 0 : index
    %55 = vector.load %arg6[%c0_55, %c6_56, %c0_57, %c0_58] : memref<1x9x8x64xf32, #tpu.memory_space<vmem>>, vector<1x1x8x64xf32>
    %56 = vector.shape_cast %55 : vector<1x1x8x64xf32> to vector<8x64xf32>
    %cst_59 = arith.constant dense<0.000000e+00> : vector<9x64xf32>
    %57 = tpu.matmul %54, %56, %cst_59 {dimension_numbers = #tpu.dot_dimension_numbers<[1], [0], [0], [1], [0, 0, 1, 1], [], []>} : vector<9x8xf32>, vector<8x64xf32>, vector<9x64xf32> -> vector<9x64xf32>
    %c6_60 = arith.constant 6 : index
    %c0_61 = arith.constant 0 : index
    %58 = vector.load %arg5[%c6_60, %c0_61] : memref<9x64xf32, #tpu.memory_space<vmem>>, vector<1x64xf32>
    %59 = vector.broadcast %58 : vector<1x64xf32> to vector<9x64xf32>
    %60 = arith.mulf %57, %59 : vector<9x64xf32>
    %61 = arith.addf %52, %60 : vector<9x64xf32>
    %c7 = arith.constant 7 : index
    %c0_62 = arith.constant 0 : index
    %c0_63 = arith.constant 0 : index
    %62 = vector.load %arg2[%c7, %c0_62, %c0_63] : memref<9x9x8xf32, #tpu.memory_space<vmem>>, vector<1x9x8xf32>
    %63 = vector.shape_cast %62 : vector<1x9x8xf32> to vector<9x8xf32>
    %c0_64 = arith.constant 0 : index
    %c7_65 = arith.constant 7 : index
    %c0_66 = arith.constant 0 : index
    %c0_67 = arith.constant 0 : index
    %64 = vector.load %arg6[%c0_64, %c7_65, %c0_66, %c0_67] : memref<1x9x8x64xf32, #tpu.memory_space<vmem>>, vector<1x1x8x64xf32>
    %65 = vector.shape_cast %64 : vector<1x1x8x64xf32> to vector<8x64xf32>
    %cst_68 = arith.constant dense<0.000000e+00> : vector<9x64xf32>
    %66 = tpu.matmul %63, %65, %cst_68 {dimension_numbers = #tpu.dot_dimension_numbers<[1], [0], [0], [1], [0, 0, 1, 1], [], []>} : vector<9x8xf32>, vector<8x64xf32>, vector<9x64xf32> -> vector<9x64xf32>
    %c7_69 = arith.constant 7 : index
    %c0_70 = arith.constant 0 : index
    %67 = vector.load %arg5[%c7_69, %c0_70] : memref<9x64xf32, #tpu.memory_space<vmem>>, vector<1x64xf32>
    %68 = vector.broadcast %67 : vector<1x64xf32> to vector<9x64xf32>
    %69 = arith.mulf %66, %68 : vector<9x64xf32>
    %70 = arith.addf %61, %69 : vector<9x64xf32>
    %c8 = arith.constant 8 : index
    %c0_71 = arith.constant 0 : index
    %c0_72 = arith.constant 0 : index
    %71 = vector.load %arg2[%c8, %c0_71, %c0_72] : memref<9x9x8xf32, #tpu.memory_space<vmem>>, vector<1x9x8xf32>
    %72 = vector.shape_cast %71 : vector<1x9x8xf32> to vector<9x8xf32>
    %c0_73 = arith.constant 0 : index
    %c8_74 = arith.constant 8 : index
    %c0_75 = arith.constant 0 : index
    %c0_76 = arith.constant 0 : index
    %73 = vector.load %arg6[%c0_73, %c8_74, %c0_75, %c0_76] : memref<1x9x8x64xf32, #tpu.memory_space<vmem>>, vector<1x1x8x64xf32>
    %74 = vector.shape_cast %73 : vector<1x1x8x64xf32> to vector<8x64xf32>
    %cst_77 = arith.constant dense<0.000000e+00> : vector<9x64xf32>
    %75 = tpu.matmul %72, %74, %cst_77 {dimension_numbers = #tpu.dot_dimension_numbers<[1], [0], [0], [1], [0, 0, 1, 1], [], []>} : vector<9x8xf32>, vector<8x64xf32>, vector<9x64xf32> -> vector<9x64xf32>
    %c8_78 = arith.constant 8 : index
    %c0_79 = arith.constant 0 : index
    %76 = vector.load %arg5[%c8_78, %c0_79] : memref<9x64xf32, #tpu.memory_space<vmem>>, vector<1x64xf32>
    %77 = vector.broadcast %76 : vector<1x64xf32> to vector<9x64xf32>
    %78 = arith.mulf %75, %77 : vector<9x64xf32>
    %79 = arith.addf %70, %78 : vector<9x64xf32>
    %c0_80 = arith.constant 0 : index
    %c0_81 = arith.constant 0 : index
    %80 = vector.load %arg3[%c0_80, %c0_81] : memref<9x1xf32, #tpu.memory_space<vmem>>, vector<9x1xf32>
    %81 = vector.broadcast %80 : vector<9x1xf32> to vector<9x64xf32>
    %82 = arith.addf %79, %81 : vector<9x64xf32>
    %c0_82 = arith.constant 0 : index
    %c0_83 = arith.constant 0 : index
    %c0_84 = arith.constant 0 : index
    %83 = vector.load %arg4[%c0_82, %c0_83, %c0_84] : memref<1x8x1xf32, #tpu.memory_space<vmem>>, vector<1x8x1xf32>
    %84 = vector.shape_cast %83 : vector<1x8x1xf32> to vector<8x1xf32>
    %85 = vector.shape_cast %84 : vector<8x1xf32> to vector<8x1xf32>
    %86 = vector.broadcast %85 : vector<8x1xf32> to vector<8x64xf32>
    %cst_85 = arith.constant dense<0xFF800000> : vector<64xf32>
    %87 = vector.multi_reduction <maximumf>, %82, %cst_85 [0] : vector<9x64xf32> to vector<64xf32>
    %88 = vector.shape_cast %87 : vector<64xf32> to vector<1x64xf32>
    %cst_86 = arith.constant dense<0x7F800000> : vector<64xf32>
    %89 = vector.multi_reduction <minimumf>, %82, %cst_86 [0] : vector<9x64xf32> to vector<64xf32>
    %90 = vector.shape_cast %89 : vector<64xf32> to vector<1x64xf32>
    %cst_87 = arith.constant 0.000000e+00 : f32
    %91 = vector.broadcast %cst_87 : f32 to vector<8x64xf32>
    %92 = arith.cmpf oge, %86, %91 : vector<8x64xf32>
    %93 = vector.broadcast %88 : vector<1x64xf32> to vector<8x64xf32>
    %94 = arith.mulf %86, %93 : vector<8x64xf32>
    %95 = vector.broadcast %90 : vector<1x64xf32> to vector<8x64xf32>
    %96 = arith.mulf %86, %95 : vector<8x64xf32>
    %97 = arith.select %92, %94, %96 : vector<8x64xi1>, vector<8x64xf32>
    %cst_88 = arith.constant 0.000000e+00 : f32
    %98 = vector.broadcast %cst_88 : f32 to vector<8x64xf32>
    %cst_89 = arith.constant 0.000000e+00 : f32
    %99 = vector.broadcast %cst_89 : f32 to vector<8x64xf32>
    %100 = vector.extract_strided_slice %82 {offsets = [0, 0], sizes = [1, 64], strides = [1, 1]} : vector<9x64xf32> to vector<1x64xf32>
    %101 = vector.broadcast %100 : vector<1x64xf32> to vector<8x64xf32>
    %102 = arith.mulf %86, %101 : vector<8x64xf32>
    %103 = arith.subf %102, %97 : vector<8x64xf32>
    %104 = math.exp %103 : vector<8x64xf32>
    %105 = arith.addf %98, %104 : vector<8x64xf32>
    %c0_90 = arith.constant 0 : index
    %c0_91 = arith.constant 0 : index
    %c0_92 = arith.constant 0 : index
    %c0_93 = arith.constant 0 : index
    %106 = vector.load %arg6[%c0_90, %c0_91, %c0_92, %c0_93] : memref<1x9x8x64xf32, #tpu.memory_space<vmem>>, vector<1x1x8x64xf32>
    %107 = vector.shape_cast %106 : vector<1x1x8x64xf32> to vector<8x64xf32>
    %108 = arith.mulf %104, %107 : vector<8x64xf32>
    %109 = arith.addf %99, %108 : vector<8x64xf32>
    %110 = vector.extract_strided_slice %82 {offsets = [1, 0], sizes = [1, 64], strides = [1, 1]} : vector<9x64xf32> to vector<1x64xf32>
    %111 = vector.broadcast %110 : vector<1x64xf32> to vector<8x64xf32>
    %112 = arith.mulf %86, %111 : vector<8x64xf32>
    %113 = arith.subf %112, %97 : vector<8x64xf32>
    %114 = math.exp %113 : vector<8x64xf32>
    %115 = arith.addf %105, %114 : vector<8x64xf32>
    %c0_94 = arith.constant 0 : index
    %c1_95 = arith.constant 1 : index
    %c0_96 = arith.constant 0 : index
    %c0_97 = arith.constant 0 : index
    %116 = vector.load %arg6[%c0_94, %c1_95, %c0_96, %c0_97] : memref<1x9x8x64xf32, #tpu.memory_space<vmem>>, vector<1x1x8x64xf32>
    %117 = vector.shape_cast %116 : vector<1x1x8x64xf32> to vector<8x64xf32>
    %118 = arith.mulf %114, %117 : vector<8x64xf32>
    %119 = arith.addf %109, %118 : vector<8x64xf32>
    %120 = vector.extract_strided_slice %82 {offsets = [2, 0], sizes = [1, 64], strides = [1, 1]} : vector<9x64xf32> to vector<1x64xf32>
    %121 = vector.broadcast %120 : vector<1x64xf32> to vector<8x64xf32>
    %122 = arith.mulf %86, %121 : vector<8x64xf32>
    %123 = arith.subf %122, %97 : vector<8x64xf32>
    %124 = math.exp %123 : vector<8x64xf32>
    %125 = arith.addf %115, %124 : vector<8x64xf32>
    %c0_98 = arith.constant 0 : index
    %c2_99 = arith.constant 2 : index
    %c0_100 = arith.constant 0 : index
    %c0_101 = arith.constant 0 : index
    %126 = vector.load %arg6[%c0_98, %c2_99, %c0_100, %c0_101] : memref<1x9x8x64xf32, #tpu.memory_space<vmem>>, vector<1x1x8x64xf32>
    %127 = vector.shape_cast %126 : vector<1x1x8x64xf32> to vector<8x64xf32>
    %128 = arith.mulf %124, %127 : vector<8x64xf32>
    %129 = arith.addf %119, %128 : vector<8x64xf32>
    %130 = vector.extract_strided_slice %82 {offsets = [3, 0], sizes = [1, 64], strides = [1, 1]} : vector<9x64xf32> to vector<1x64xf32>
    %131 = vector.broadcast %130 : vector<1x64xf32> to vector<8x64xf32>
    %132 = arith.mulf %86, %131 : vector<8x64xf32>
    %133 = arith.subf %132, %97 : vector<8x64xf32>
    %134 = math.exp %133 : vector<8x64xf32>
    %135 = arith.addf %125, %134 : vector<8x64xf32>
    %c0_102 = arith.constant 0 : index
    %c3_103 = arith.constant 3 : index
    %c0_104 = arith.constant 0 : index
    %c0_105 = arith.constant 0 : index
    %136 = vector.load %arg6[%c0_102, %c3_103, %c0_104, %c0_105] : memref<1x9x8x64xf32, #tpu.memory_space<vmem>>, vector<1x1x8x64xf32>
    %137 = vector.shape_cast %136 : vector<1x1x8x64xf32> to vector<8x64xf32>
    %138 = arith.mulf %134, %137 : vector<8x64xf32>
    %139 = arith.addf %129, %138 : vector<8x64xf32>
    %140 = vector.extract_strided_slice %82 {offsets = [4, 0], sizes = [1, 64], strides = [1, 1]} : vector<9x64xf32> to vector<1x64xf32>
    %141 = vector.broadcast %140 : vector<1x64xf32> to vector<8x64xf32>
    %142 = arith.mulf %86, %141 : vector<8x64xf32>
    %143 = arith.subf %142, %97 : vector<8x64xf32>
    %144 = math.exp %143 : vector<8x64xf32>
    %145 = arith.addf %135, %144 : vector<8x64xf32>
    %c0_106 = arith.constant 0 : index
    %c4_107 = arith.constant 4 : index
    %c0_108 = arith.constant 0 : index
    %c0_109 = arith.constant 0 : index
    %146 = vector.load %arg6[%c0_106, %c4_107, %c0_108, %c0_109] : memref<1x9x8x64xf32, #tpu.memory_space<vmem>>, vector<1x1x8x64xf32>
    %147 = vector.shape_cast %146 : vector<1x1x8x64xf32> to vector<8x64xf32>
    %148 = arith.mulf %144, %147 : vector<8x64xf32>
    %149 = arith.addf %139, %148 : vector<8x64xf32>
    %150 = vector.extract_strided_slice %82 {offsets = [5, 0], sizes = [1, 64], strides = [1, 1]} : vector<9x64xf32> to vector<1x64xf32>
    %151 = vector.broadcast %150 : vector<1x64xf32> to vector<8x64xf32>
    %152 = arith.mulf %86, %151 : vector<8x64xf32>
    %153 = arith.subf %152, %97 : vector<8x64xf32>
    %154 = math.exp %153 : vector<8x64xf32>
    %155 = arith.addf %145, %154 : vector<8x64xf32>
    %c0_110 = arith.constant 0 : index
    %c5_111 = arith.constant 5 : index
    %c0_112 = arith.constant 0 : index
    %c0_113 = arith.constant 0 : index
    %156 = vector.load %arg6[%c0_110, %c5_111, %c0_112, %c0_113] : memref<1x9x8x64xf32, #tpu.memory_space<vmem>>, vector<1x1x8x64xf32>
    %157 = vector.shape_cast %156 : vector<1x1x8x64xf32> to vector<8x64xf32>
    %158 = arith.mulf %154, %157 : vector<8x64xf32>
    %159 = arith.addf %149, %158 : vector<8x64xf32>
    %160 = vector.extract_strided_slice %82 {offsets = [6, 0], sizes = [1, 64], strides = [1, 1]} : vector<9x64xf32> to vector<1x64xf32>
    %161 = vector.broadcast %160 : vector<1x64xf32> to vector<8x64xf32>
    %162 = arith.mulf %86, %161 : vector<8x64xf32>
    %163 = arith.subf %162, %97 : vector<8x64xf32>
    %164 = math.exp %163 : vector<8x64xf32>
    %165 = arith.addf %155, %164 : vector<8x64xf32>
    %c0_114 = arith.constant 0 : index
    %c6_115 = arith.constant 6 : index
    %c0_116 = arith.constant 0 : index
    %c0_117 = arith.constant 0 : index
    %166 = vector.load %arg6[%c0_114, %c6_115, %c0_116, %c0_117] : memref<1x9x8x64xf32, #tpu.memory_space<vmem>>, vector<1x1x8x64xf32>
    %167 = vector.shape_cast %166 : vector<1x1x8x64xf32> to vector<8x64xf32>
    %168 = arith.mulf %164, %167 : vector<8x64xf32>
    %169 = arith.addf %159, %168 : vector<8x64xf32>
    %170 = vector.extract_strided_slice %82 {offsets = [7, 0], sizes = [1, 64], strides = [1, 1]} : vector<9x64xf32> to vector<1x64xf32>
    %171 = vector.broadcast %170 : vector<1x64xf32> to vector<8x64xf32>
    %172 = arith.mulf %86, %171 : vector<8x64xf32>
    %173 = arith.subf %172, %97 : vector<8x64xf32>
    %174 = math.exp %173 : vector<8x64xf32>
    %175 = arith.addf %165, %174 : vector<8x64xf32>
    %c0_118 = arith.constant 0 : index
    %c7_119 = arith.constant 7 : index
    %c0_120 = arith.constant 0 : index
    %c0_121 = arith.constant 0 : index
    %176 = vector.load %arg6[%c0_118, %c7_119, %c0_120, %c0_121] : memref<1x9x8x64xf32, #tpu.memory_space<vmem>>, vector<1x1x8x64xf32>
    %177 = vector.shape_cast %176 : vector<1x1x8x64xf32> to vector<8x64xf32>
    %178 = arith.mulf %174, %177 : vector<8x64xf32>
    %179 = arith.addf %169, %178 : vector<8x64xf32>
    %180 = vector.extract_strided_slice %82 {offsets = [8, 0], sizes = [1, 64], strides = [1, 1]} : vector<9x64xf32> to vector<1x64xf32>
    %181 = vector.broadcast %180 : vector<1x64xf32> to vector<8x64xf32>
    %182 = arith.mulf %86, %181 : vector<8x64xf32>
    %183 = arith.subf %182, %97 : vector<8x64xf32>
    %184 = math.exp %183 : vector<8x64xf32>
    %185 = arith.addf %175, %184 : vector<8x64xf32>
    %c0_122 = arith.constant 0 : index
    %c8_123 = arith.constant 8 : index
    %c0_124 = arith.constant 0 : index
    %c0_125 = arith.constant 0 : index
    %186 = vector.load %arg6[%c0_122, %c8_123, %c0_124, %c0_125] : memref<1x9x8x64xf32, #tpu.memory_space<vmem>>, vector<1x1x8x64xf32>
    %187 = vector.shape_cast %186 : vector<1x1x8x64xf32> to vector<8x64xf32>
    %188 = arith.mulf %184, %187 : vector<8x64xf32>
    %189 = arith.addf %179, %188 : vector<8x64xf32>
    %190 = tpu.reciprocal %185 {approx = true} : vector<8x64xf32> -> vector<8x64xf32>
    %191 = arith.mulf %185, %190 : vector<8x64xf32>
    %cst_126 = arith.constant 2.000000e+00 : f32
    %192 = vector.broadcast %cst_126 : f32 to vector<8x64xf32>
    %193 = arith.subf %192, %191 : vector<8x64xf32>
    %194 = arith.mulf %190, %193 : vector<8x64xf32>
    %195 = arith.mulf %189, %194 : vector<8x64xf32>
    %c0_127 = arith.constant 0 : index
    %c0_128 = arith.constant 0 : index
    %c0_129 = arith.constant 0 : index
    %196 = vector.load %arg7[%c0_127, %c0_128, %c0_129] : memref<1x8x64xf32, #tpu.memory_space<vmem>>, vector<1x8x64xf32>
    %197 = vector.shape_cast %196 : vector<1x8x64xf32> to vector<8x64xf32>
    %198 = vector.shape_cast %195 : vector<8x64xf32> to vector<1x8x64xf32>
    tpu.vector_store %arg7[%c0_127, %c0_128, %c0_129], %198 {strides = array<i32>} : memref<1x8x64xf32, #tpu.memory_space<vmem>>, vector<1x8x64xf32>,
    return
  }
  func.func @transform_0(%arg0: i32, %arg1: i32) -> (i32, i32, i32) {
    %c0_i32 = arith.constant 0 : i32
    %c0_i32_0 = arith.constant 0 : i32
    %c0_i32_1 = arith.constant 0 : i32
    %c0_i32_2 = arith.constant 0 : i32
    return %c0_i32, %c0_i32_0, %c0_i32_1 : i32, i32, i32
  }
  func.func @transform_1(%arg0: i32, %arg1: i32) -> (i32, i32) {
    %c0_i32 = arith.constant 0 : i32
    %c0_i32_0 = arith.constant 0 : i32
    %c0_i32_1 = arith.constant 0 : i32
    return %c0_i32, %c0_i32_0 : i32, i32
  }
  func.func @transform_2(%arg0: i32, %arg1: i32) -> (i32, i32, i32) {
    %c0_i32 = arith.constant 0 : i32
    %c0_i32_0 = arith.constant 0 : i32
    %c0_i32_1 = arith.constant 0 : i32
    return %arg1, %c0_i32, %c0_i32_0 : i32, i32, i32
  }
  func.func @transform_3(%arg0: i32, %arg1: i32) -> (i32, i32) {
    %c0_i32 = arith.constant 0 : i32
    %c0_i32_0 = arith.constant 0 : i32
    return %c0_i32, %arg0 : i32, i32
  }
  func.func @transform_4(%arg0: i32, %arg1: i32) -> (i32, i32, i32, i32) {
    %c0_i32 = arith.constant 0 : i32
    %c0_i32_0 = arith.constant 0 : i32
    %c0_i32_1 = arith.constant 0 : i32
    return %arg1, %c0_i32, %c0_i32_0, %arg0 : i32, i32, i32, i32
  }
  func.func @transform_5(%arg0: i32, %arg1: i32) -> (i32, i32, i32) {
    %c0_i32 = arith.constant 0 : i32
    %c0_i32_0 = arith.constant 0 : i32
    return %arg1, %c0_i32, %arg0 : i32, i32, i32
  }
}

</mosaic_0001>

<bundles_post_ra>
// kernel: tpu_custom_call.1
= control target key start
LH: loop header
LB: loop body
LE: loop exit
PB: predicated region body
PF: predicated region fallthrough
CT: control target
= control target key end

     0   :  { %10 = vsyncpa [#allocation3], 0  ;;  %s2005_s0 = inlined_call_operand.vmem [shape: f32[9,9,8], index: 0, kind: input, shape index: {}]   ;;  %s2006_s1 = inlined_call_operand.vmem [shape: f32[9,1], index: 1, kind: input, shape index: {}]   ;;  %s2007_s2 = inlined_call_operand.vmem [shape: f32[2,8,1], index: 2, kind: input, shape index: {}]   ;;  %s2008_s3 = inlined_call_operand.vmem [shape: f32[9,64], index: 3, kind: input, shape index: {}]   ;;  %s2009_s4 = inlined_call_operand.vmem [shape: f32[2,9,8,64], index: 4, kind: input, shape index: {}]   ;;  %s2010_s5 = inlined_call_operand.hbm [shape: f32[2,8,64], index: 5, kind: output, shape index: {}]  }
   0x1   :  { %12 = vsyncpa [#allocation3 + $0x1], 0  ;;  %s1726_s18 = smov 0   ;;  %s1728_s19 = smov 0  }
   0x2   :  { %s1730_s20 = smov 0   ;;  %s1732_s21 = smov 0  }
   0x3   :  { %s1734_s22 = smov 0   ;;  %s1736_s23 = smov 0  }
   0x4 LB: > { %s1399_s24 = sadd.s32 4294967295, %s1692_s23   ;;  %s1400_s25 = sadd.s32 4294967294, %s1692_s23   ;;  %s1692_s23 = sphi %s1736_s23, %s18_s23   ;;  %s1688_s22 = sphi %s1734_s22, %s2017_s22   ;;  %s1684_s21 = sphi %s1732_s21, %s2016_s21   ;;  %s1680_s20 = sphi %s1730_s20, %s2015_s20   ;;  %s1676_s19 = sphi %s1728_s19, %s2014_s19   ;;  %s1672_s18 = sphi %s1726_s18, %s2013_s18  }
   0x5   : > { %s27_s26 = sadd.s32 1, %s1688_s22  ;;  %s161_s27 = sadd.s32 1, %s1680_s20 }
   0x6   : > { %p28_p0 = scmp.ge.s32.totalorder %s27_s26, 2  ;;  %p171_p1 = scmp.ne.s32.totalorder %s1680_s20, %s1676_s19 }
   0x7   : > { %p172_p2 = scmp.eq.s32.totalorder %s1399_s24, 1  ;;  %p177_p3 = scmp.ne.s32.totalorder %s1676_s19, %s1672_s18 }
   0x8   : > { %s2019_s26 = smov (%p28_p0, %s27_s26), 0  ;;  %p178_p5 = scmp.eq.s32.totalorder %s1400_s25, 1 }
   0x9   : > { %p1766_p4 = por %p172_p2, %p171_p1  ;;  %s156_s29 = ssub.s32 %s1688_s22, %s2019_s26 }
   0xa   : > { %p1404_p6 = scmp.ge.s32.totalorder %s1692_s23, 1  ;;  %p159_p7 = scmp.eq.s32.totalorder %s156_s29, 0 }
   0xb   : > { %p1773_p8 = por %p178_p5, %p177_p3  ;;  %p227_p9 = scmp.lt.s32.totalorder %s1692_s23, 3 }
   0xc   : > { %s1779_s6 = scalar_select %p159_p7, %s1680_s20, %s161_s27  }
   0xd   : > { %p228_p10 = pnand %p1404_p6, %p227_p9 }
   0xe   : > { %p266_p11 = scmp.lt.s32.totalorder (!%p228_p10), %s1684_s21, 1  ;;  %v282_v0 = vld [vmem:[%s2005_s0] sm:$0xff] (!%p228_p10)  ;;  %vm285_vm0 = vcmask (!%p228_p10), 64512   ;;  %v1411_v1 = vld [vmem:[%s2005_s0 + $0x10] sm:$0xff] (!%p228_p10)  ;;  %v1694_v2 = vmov (!%p228_p10), 0   ;;  %vm1156_vm1 = vcmask (!%p228_p10), 516096  }
   0xf   : > { %231 = sbr.rel (%p228_p10) target bundleno = 348 (0x15c), region = 40  ;;  %1492 = vmatprep.mubr.msk.f32.mxu0 (!%p228_p10), %vm285_vm0, %v282_v0  ;;  %1497 = vmatprep.mubr.msk.f32.mxu1 (!%p228_p10), %vm285_vm0, %v1411_v1  ;;  %v283_v3 = vld [vmem:[%s2005_s0 + $0x8] sm:$0x1] (!%p228_p10)  ;;  %v1134_v4 = vld [vmem:[%s2006_s1] sm:$0xff] (!%p228_p10)  ;;  %v1412_v8 = vld [vmem:[%s2005_s0 + $0x18] sm:$0x1] (!%p228_p10) }
  0x10   : > { %1592 = vset.pattern.permute.xlu0 (!%p228_p10), %v1694_v2  ;;  %1593 = vset.pattern.permute.xlu1 (!%p228_p10), %v1694_v2  ;;  %v1417_v11 = vld [vmem:[%s2005_s0 + $0x20] sm:$0xff] (!%p228_p10)  ;;  %v1418_v13 = vld [vmem:[%s2005_s0 + $0x28] sm:$0x1] (!%p228_p10)  ;;  %v1423_v14 = vld [vmem:[%s2005_s0 + $0x30] sm:$0xff] (!%p228_p10)  ;;  %vm1154_vm2 = vcmask (!%p228_p10), 523264   ;;  %s263_s15 = sand.u32 (!%p228_p10), 1, %s1676_s19  }
  0x11   : > { %1138 = vperm.xlu0 (!%p228_p10), %1592, %v1134_v4   ;;  %v1424_v15 = vld [vmem:[%s2005_s0 + $0x38] sm:$0x1] (!%p228_p10)  ;;  %v1429_v17 = vld [vmem:[%s2005_s0 + $0x40] sm:$0xff] (!%p228_p10)  ;;  %v1430_v19 = vld [vmem:[%s2005_s0 + $0x48] sm:$0x1] (!%p228_p10)  ;;  %s1460_s17 = sshll.u32 (!%p228_p10), %s1684_s21, 7 }
  0x12   : > { %v1435_v20 = vld [vmem:[%s2005_s0 + $0x50] sm:$0xff] (!%p228_p10)  ;;  %v1436_v21 = vld [vmem:[%s2005_s0 + $0x58] sm:$0x1] (!%p228_p10)  ;;  %v1441_v23 = vld [vmem:[%s2005_s0 + $0x60] sm:$0xff] (!%p228_p10)  ;;  %s1957_s7 = scalar_lea.hbm (!%p228_p10), %s2010_s5, %s1460_s17  ;;  %s1284_s8 = scalar_lea.sflag (!%p228_p10), [#allocation3], %s263_s15 }
  0x13   : > { %v1442_v25 = vld [vmem:[%s2005_s0 + $0x68] sm:$0x1] (!%p228_p10)  ;;  %v1447_v26 = vld [vmem:[%s2005_s0 + $0x70] sm:$0xff] (!%p228_p10)  ;;  %v1448_v27 = vld [vmem:[%s2005_s0 + $0x78] sm:$0x1] (!%p228_p10) }
  0x14   : > { %v1453_v28 = vld [vmem:[%s2005_s0 + $0x80] sm:$0xff] (!%p228_p10)  ;;  %v1135_v29 = vld [vmem:[%s2006_s1 + $0x8] sm:$0x1] (!%p228_p10) }
  0x15   : > { %v1454_v30 = vld [vmem:[%s2005_s0 + $0x88] sm:$0x1] (!%p228_p10)  ;;  %1143 = vperm.xlu0 (!%p228_p10), %1592, %v1135_v29   ;;  %v1410_v31 = vld [vmem:[%s2008_s3] ss:$0 sm:$0xff] (!%p228_p10)  ;;  %v1416_v32 = vld [vmem:[%s2008_s3 + $0x1] ss:$0 sm:$0xff] (!%p228_p10) }
  0x16   : > { %s267_s11 = scalar_select %p266_p11, %s1684_s21, 1  ;;  %v1422_v41 = vld [vmem:[%s2008_s3 + $0x2] ss:$0 sm:$0xff]  ;;  %v1428_v43 = vld [vmem:[%s2008_s3 + $0x3] ss:$0 sm:$0xff] }
  0x17   : > { %v1434_v52 = vld [vmem:[%s2008_s3 + $0x4] ss:$0 sm:$0xff]  ;;  %v1440_v55 = vld [vmem:[%s2008_s3 + $0x5] ss:$0 sm:$0xff]  ;;  %v1446_v2 = vld [vmem:[%s2008_s3 + $0x6] ss:$0 sm:$0xff] }
  0x18   : > { %s1535_s12 = smul.u32 72, %s267_s11  ;;  %s1406_s13 = sshll.u32 %s267_s11, 3 }
  0x19   : > { %s269_s16 = scalar_lea.vmem %s2007_s2, %s1406_s13  ;;  %s1695_s21 = smov [#allocation2]  }
  0x1a   : > { %s1797_s25 = scalar_lea.vmem %s2009_s4, %s1535_s12  ;;  %v1148_v5 = vld [vmem:[%s269_s16] sm:$0xff]  ;;  %s1405_s16 = sshll.u32 %s263_s15, 3 }
  0x1b   : > { %v1806_v6 = vld [vmem:[%s1797_s25] sm:$0xff]  ;;  %v1809_v7 = vld [vmem:[%s1797_s25 + $0x8] sm:$0xff]  ;;  %1151 = vperm.xlu1 %1593, %v1148_v5   ;;  %v1817_v9 = vld [vmem:[%s1797_s25 + $0x10] sm:$0xff]  ;;  %s265_s24 = scalar_lea.vmem [#allocation2], %s1405_s16  ;;  %s1618_s10 = sshll.u32 %s1695_s21, 4  ;;  %s1619_s10 = int_to_ptr.vmem [resolvable:$false] %s1618_s10 }
  0x1c   : > { %1490 = vmatprep.subr.mxu0 %v1806_v6  ;;  %1495 = vmatprep.subr.mxu1 %v1809_v7  ;;  %v1820_v10 = vld [vmem:[%s1797_s25 + $0x18] sm:$0xff]  ;;  %v1830_v12 = vld [vmem:[%s1797_s25 + $0x20] sm:$0xff]  ;;  %v1848_v16 = vld [vmem:[%s1797_s25 + $0x28] sm:$0xff]  ;;  %s1298_s27 = sshll.u32 %s265_s24, 4  ;;  %s1620_s11 = scalar_lea.vmem %s1619_s10, 256  ;;  %s1959_s27 = int_to_ptr.vmem [resolvable:$true] %s1298_s27 }
  0x1d   : > { %1491 = vmatpush3.msra.mxu0 %v1806_v6  ;;  %1496 = vmatpush3.msra.mxu1 %v1809_v7  ;;  %v1856_v18 = vld [vmem:[%s1797_s25 + $0x30] sm:$0xff]  ;;  %v1874_v22 = vld [vmem:[%s1797_s25 + $0x38] sm:$0xff]  ;;  %v1882_v24 = vld [vmem:[%s1797_s25 + $0x40] sm:$0xff]  ;;  %s1614_s9 = scalar_lea.vmem %s1959_s27, 128  ;;  %p1621_p1 = scmp.lt.s32.totalorder %s1959_s27, %s1619_s10 }
  0x1e   : > { %1493 = vmatmul.mubr.msk.f32.vlgmr.msra.gmra.mrb[0].mxu0 %vm285_vm0, %v283_v3  ;;  %1498 = vmatmul.mubr.msk.f32.vlgmr.msra.gmra.mrb[0].mxu1 %vm285_vm0, %v1412_v8  ;;  %v1452_v5 = vld [vmem:[%s2008_s3 + $0x7] ss:$0 sm:$0xff]  ;;  %p1615_p12 = scmp.ne.s32.totalorder %s1959_s27, %s1614_s9  ;;  %p1622_p2 = scmp.lt.s32.totalorder %s1620_s11, %s1614_s9 }
  0x1f   : > { %1500 = vmatprep.subr.mxu0 %v1817_v9  ;;  %1505 = vmatprep.subr.mxu1 %v1820_v10 }
  0x20   : > { %1501 = vmatpush3.msra.mxu0 %v1817_v9  ;;  %1502 = vmatprep.mubr.msk.f32.mxu0 %vm285_vm0, %v1417_v11  ;;  %p1616_p13 = pnand %p1615_p12, %p1766_p4  ;;  %p1623_p3 = por %p1622_p2, %p1621_p1 }
  0x21   : > { %1506 = vmatpush3.msra.mxu1 %v1820_v10  ;;  %1510 = vmatprep.subr.mxu0 %v1830_v12 }
  0x22   : > { %1503 = vmatmul.mubr.msk.f32.vlgmr.msra.gmra.mrb[2].mxu0 %vm285_vm0, %v1418_v13  ;;  %1507 = vmatprep.mubr.msk.f32.mxu1 %vm285_vm0, %v1423_v14  ;;  %p1617_p0 = pneg %p1616_p13 }
  0x23   : > { %1511 = vmatpush3.msra.mxu0 %v1830_v12  ;;  %1508 = vmatmul.mubr.msk.f32.vlgmr.msra.gmra.mrb[2].mxu1 %vm285_vm0, %v1424_v15 }
  0x24   : > { %1515 = vmatprep.subr.mxu1 %v1848_v16  ;;  %1512 = vmatprep.mubr.msk.f32.mxu0 %vm285_vm0, %v1429_v17  ;;  %p1624_p5 = pnand %p1623_p3, %p1617_p0 }
  0x25   : > { %1516 = vmatpush3.msra.mxu1 %v1848_v16  ;;  %1520 = vmatprep.subr.mxu0 %v1856_v18 }
  0x26   : > { %1513 = vmatmul.mubr.msk.f32.vlgmr.msra.gmra.mrb[4].mxu0 %vm285_vm0, %v1430_v19  ;;  %1517 = vmatprep.mubr.msk.f32.mxu1 %vm285_vm0, %v1435_v20 }
  0x27   : > { %1521 = vmatpush3.msra.mxu0 %v1856_v18  ;;  %1518 = vmatmul.mubr.msk.f32.vlgmr.msra.gmra.mrb[4].mxu1 %vm285_vm0, %v1436_v21 }
  0x28   : > { %1525 = vmatprep.subr.mxu1 %v1874_v22  ;;  %1522 = vmatprep.mubr.msk.f32.mxu0 %vm285_vm0, %v1441_v23 }
  0x29   : > { %1526 = vmatpush3.msra.mxu1 %v1874_v22  ;;  %1530 = vmatprep.subr.mxu0 %v1882_v24 }
  0x2a   : > { %1523 = vmatmul.mubr.msk.f32.vlgmr.msra.gmra.mrb[6].mxu0 %vm285_vm0, %v1442_v25  ;;  %1527 = vmatprep.mubr.msk.f32.mxu1 %vm285_vm0, %v1447_v26  ;;  %v1458_v26 = vld [vmem:[%s2008_s3 + $0x8] ss:$0 sm:$0xff] }
  0x2b   : > { %1531 = vmatpush3.msra.mxu0 %v1882_v24  ;;  %1528 = vmatmul.mubr.msk.f32.vlgmr.msra.gmra.mrb[6].mxu1 %vm285_vm0, %v1448_v27 }
  0x2c   : > { %1532 = vmatprep.mubr.msk.f32.mxu0 %vm285_vm0, %v1453_v28 }
  0x2e   : > { %1533 = vmatmul.mubr.msk.f32.vlgmr.msra.gmra.mrb[8].mxu0 %vm285_vm0, %v1454_v30 }
  0x90   : > { %v1139_v21 = vpop.permute.xlu0 %1138 }
  0xf1   : > { %v1494_v33 = vpop.f32.mrb[0].mxu0  ;;  %v1499_v34 = vpop.f32.mrb[0].mxu1 }
  0xf2   : > { %v373_v35 = vmul.f32 %v1494_v33, %v1410_v31  ;;  %v466_v36 = vmul.f32 %v1499_v34, %v1416_v32  ;;  %v358_v37 = vpop.f32.mrb[1].mxu0  ;;  %v451_v38 = vpop.f32.mrb[1].mxu1 }
  0xf3   : > { %v372_v39 = vmul.f32 %v1410_v31, %v358_v37  ;;  %v465_v40 = vmul.f32 %v1416_v32, %v451_v38  ;;  %v1144_v38 = vpop.permute.xlu0 %1143 }
  0xf4   : > { %v468_v42 = vadd.f32 %v466_v36, %v373_v35 }
  0xf5   : > { %v467_v44 = vadd.f32 %v465_v40, %v372_v39  ;;  %v1504_v45 = vpop.f32.mrb[2].mxu0 }
  0xf6   : > { %v561_v46 = vmul.f32 %v1504_v45, %v1422_v41  ;;  %v546_v47 = vpop.f32.mrb[3].mxu0  ;;  %v1509_v48 = vpop.f32.mrb[2].mxu1 }
  0xf7   : > { %v560_v49 = vmul.f32 %v1422_v41, %v546_v47  ;;  %v656_v50 = vmul.f32 %v1509_v48, %v1428_v43  ;;  %v641_v51 = vpop.f32.mrb[3].mxu1  ;;  %v1178_v41 = vlaneseq }
  0xf8   : > { %v563_v53 = vadd.f32 %v561_v46, %v468_v42  ;;  %v655_v54 = vmul.f32 %v1428_v43, %v641_v51 }
  0xf9   : > { %v562_v56 = vadd.f32 %v560_v49, %v467_v44  ;;  %v1514_v57 = vpop.f32.mrb[4].mxu0  ;;  %v1179_v48 = vshrl.u32 %v1178_v41, 7 }
  0xfa   : > { %v658_v58 = vadd.f32 %v656_v50, %v563_v53  ;;  %v751_v59 = vmul.f32 %v1514_v57, %v1434_v52  ;;  %v736_v60 = vpop.f32.mrb[5].mxu0  ;;  %v1519_v61 = vpop.f32.mrb[4].mxu1 }
  0xfb   : > { %v657_v62 = vadd.f32 %v655_v54, %v562_v56  ;;  %v750_v63 = vmul.f32 %v1434_v52, %v736_v60  ;;  %v846_v0 = vmul.f32 %v1519_v61, %v1440_v55  ;;  %v831_v1 = vpop.f32.mrb[5].mxu1  ;;  %v1180_v53 = vsub.s32 0, %v1179_v48 }
  0xfc   : > { %v753_v3 = vadd.f32 %v751_v59, %v658_v58  ;;  %v845_v4 = vmul.f32 %v1440_v55, %v831_v1  ;;  %v1191_v54 = vsub.s32 1, %v1179_v48  ;;  %v1202_v57 = vsub.s32 2, %v1179_v48 }
  0xfd   : > { %v752_v8 = vadd.f32 %v750_v63, %v657_v62  ;;  %v1524_v11 = vpop.f32.mrb[6].mxu0  ;;  %v1213_v58 = vsub.s32 3, %v1179_v48  ;;  %v1224_v59 = vsub.s32 4, %v1179_v48  ;;  %v1235_v60 = vsub.s32 5, %v1179_v48 }
  0xfe   : > { %v848_v13 = vadd.f32 %v846_v0, %v753_v3  ;;  %v941_v14 = vmul.f32 %v1524_v11, %v1446_v2  ;;  %v926_v15 = vpop.f32.mrb[7].mxu0  ;;  %v1529_v17 = vpop.f32.mrb[6].mxu1  ;;  %v1246_v63 = vsub.s32 6, %v1179_v48  ;;  %v1257_v0 = vsub.s32 7, %v1179_v48 }
  0xff   : > { %v847_v19 = vadd.f32 %v845_v4, %v752_v8  ;;  %v940_v20 = vmul.f32 %v1446_v2, %v926_v15  ;;  %v1036_v23 = vmul.f32 %v1529_v17, %v1452_v5  ;;  %v1021_v25 = vpop.f32.mrb[7].mxu1 }
 0x100   : > { %v943_v27 = vadd.f32 %v941_v14, %v848_v13  ;;  %v1035_v28 = vmul.f32 %v1452_v5, %v1021_v25  ;;  %v1152_v13 = vpop.permute.xlu1 %1151 }
 0x101   : > { %v942_v29 = vadd.f32 %v940_v20, %v847_v19  ;;  %v1534_v30 = vpop.f32.mrb[8].mxu0  ;;  %vm1174_vm3 = vcmp.ge.f32.partialorder %v1152_v13, 0.0 }
 0x102   : > { %v1038_v31 = vadd.f32 %v1036_v23, %v943_v27  ;;  %v1131_v32 = vmul.f32 %v1534_v30, %v1458_v26  ;;  %v1116_v33 = vpop.f32.mrb[9].mxu0 }
 0x103   : > { %v1037_v34 = vadd.f32 %v1035_v28, %v942_v29  ;;  %v1130_v35 = vmul.f32 %v1458_v26, %v1116_v33 }
 0x104   : > { %v1133_v36 = vadd.f32 %v1131_v32, %v1038_v31 }
 0x105   : > { %v1132_v37 = vadd.f32 %v1130_v35, %v1037_v34 }
 0x106   : > { %v1147_v39 = vadd.f32 %v1144_v38, %v1133_v36 }
 0x107   : > { %v1146_v40 = vadd.f32 %v1139_v21, %v1132_v37 }
 0x108   : > { %v1157_v42 = vsel %vm1156_vm1, %v1147_v39, -inf  ;;  %v1166_v43 = vsel %vm1156_vm1, %v1147_v39, inf  ;;  %v1269_v1 = vrot.slane %v1147_v39, %v1180_v53 }
 0x109   : > { %v1155_v44 = vsel %vm1154_vm2, %v1146_v40, -inf  ;;  %v1165_v45 = vsel %vm1154_vm2, %v1146_v40, inf  ;;  %v1181_v2 = vrot.slane %v1146_v40, %v1180_v53  ;;  %v1192_v3 = vrot.slane %v1146_v40, %v1191_v54 }
 0x10a   : > { %v1158_v46 = vmax.f32 %v1155_v44, %v1157_v42  ;;  %v1167_v47 = vmin.f32 %v1165_v45, %v1166_v43  ;;  %v1203_v8 = vrot.slane %v1146_v40, %v1202_v57  ;;  %v1214_v11 = vrot.slane %v1146_v40, %v1213_v58 }
 0x10b   : > { %v1225_v14 = vrot.slane %v1146_v40, %v1224_v59  ;;  %v1236_v15 = vrot.slane %v1146_v40, %v1235_v60  ;;  %v1247_v20 = vrot.slane %v1146_v40, %v1246_v63  ;;  %v1258_v21 = vrot.slane %v1146_v40, %v1257_v0 }
 0x10c   : > { %v1159_v49 = vrot.slane %v1158_v46, 4  ;;  %v1168_v50 = vrot.slane %v1167_v47, 4  ;;  %v1182_v23 = vmul.f32 %v1181_v2, %v1152_v13  ;;  %v1193_v25 = vmul.f32 %v1192_v3, %v1152_v13 }
 0x10d   : > { %v1204_v28 = vmul.f32 %v1203_v8, %v1152_v13  ;;  %v1215_v29 = vmul.f32 %v1214_v11, %v1152_v13  ;;  %v1226_v30 = vmul.f32 %v1225_v14, %v1152_v13  ;;  %v1237_v31 = vmul.f32 %v1236_v15, %v1152_v13 }
 0x10e   : > { %v1160_v51 = vmax.f32 %v1158_v46, %v1159_v49  ;;  %v1169_v52 = vmin.f32 %v1167_v47, %v1168_v50  ;;  %v1248_v33 = vmul.f32 %v1247_v20, %v1152_v13  ;;  %v1259_v34 = vmul.f32 %v1258_v21, %v1152_v13 }
 0x10f   : > { %v1270_v35 = vmul.f32 %v1269_v1, %v1152_v13 }
 0x110   : > { %v1161_v55 = vrot.slane %v1160_v51, 2  ;;  %v1170_v56 = vrot.slane %v1169_v52, 2 }
 0x112   : > { %v1162_v61 = vmax.f32 %v1160_v51, %v1161_v55  ;;  %v1171_v62 = vmin.f32 %v1169_v52, %v1170_v56 }
 0x114   : > { %v1163_v4 = vrot.slane %v1162_v61, 1  ;;  %v1172_v5 = vrot.slane %v1171_v62, 1 }
 0x116   : > { %v1164_v17 = vmax.f32 %v1162_v61, %v1163_v4  ;;  %v1173_v19 = vmin.f32 %v1171_v62, %v1172_v5 }
 0x118   : > { %v1175_v26 = vmul.f32 %v1164_v17, %v1152_v13  ;;  %v1176_v27 = vmul.f32 %v1173_v19, %v1152_v13 }
 0x11a   : > { %v1177_v32 = vsel %vm1174_vm3, %v1175_v26, %v1176_v27 }
 0x11b   : > { %v1183_v36 = vsub.f32 %v1182_v23, %v1177_v32  ;;  %v1194_v37 = vsub.f32 %v1193_v25, %v1177_v32  ;;  %v1205_v38 = vsub.f32 %v1204_v28, %v1177_v32  ;;  %v1216_v39 = vsub.f32 %v1215_v29, %v1177_v32 }
 0x11c   : > { %v1227_v41 = vsub.f32 %v1226_v30, %v1177_v32  ;;  %v1238_v42 = vsub.f32 %v1237_v31, %v1177_v32  ;;  %v1249_v40 = vsub.f32 %v1248_v33, %v1177_v32  ;;  %v1260_v43 = vsub.f32 %v1259_v34, %v1177_v32 }
 0x11d   : > { %v1184_v44 = vmul.f32 1.442695, %v1183_v36  ;;  %v1195_v45 = vmul.f32 1.442695, %v1194_v37  ;;  %v1206_v46 = vmul.f32 1.442695, %v1205_v38  ;;  %v1271_v47 = vsub.f32 %v1270_v35, %v1177_v32 }
 0x11e   : > { %v1217_v48 = vmul.f32 1.442695, %v1216_v39  ;;  %v1228_v49 = vmul.f32 1.442695, %v1227_v41  ;;  %v1239_v50 = vmul.f32 1.442695, %v1238_v42 }
 0x11f   : > { %1594 = vpow2.f32 %v1184_v44  ;;  %v1250_v51 = vmul.f32 1.442695, %v1249_v40  ;;  %v1261_v52 = vmul.f32 1.442695, %v1260_v43  ;;  %v1272_v53 = vmul.f32 1.442695, %v1271_v47 }
 0x120   : > { %1596 = vpow2.f32 %v1195_v45 }
 0x121   : > { %1598 = vpow2.f32 %v1206_v46 }
 0x122   : > { %1600 = vpow2.f32 %v1217_v48 }
 0x123   : > { %1602 = vpow2.f32 %v1228_v49 }
 0x124   : > { %1604 = vpow2.f32 %v1239_v50 }
 0x125   : > { %1606 = vpow2.f32 %v1250_v51 }
 0x126   : > { %1608 = vpow2.f32 %v1261_v52 }
 0x127   : > { %1610 = vpow2.f32 %v1272_v53 }
 0x129   : > { %v1595_v54 = vpop.eup %1594 }
 0x12a   : > { %v1597_v55 = vpop.eup %1596  ;;  %v1187_v56 = vmul.f32 %v1595_v54, %v1806_v6 }
 0x12b   : > { %v1599_v57 = vpop.eup %1598  ;;  %v1197_v58 = vadd.f32 %v1597_v55, %v1595_v54  ;;  %v1198_v59 = vmul.f32 %v1597_v55, %v1809_v7 }
 0x12c   : > { %v1601_v60 = vpop.eup %1600  ;;  %v1209_v63 = vmul.f32 %v1599_v57, %v1817_v9 }
 0x12d   : > { %v1199_v61 = vadd.f32 %v1198_v59, %v1187_v56  ;;  %v1208_v62 = vadd.f32 %v1599_v57, %v1197_v58  ;;  %v1603_v0 = vpop.eup %1602  ;;  %v1220_v3 = vmul.f32 %v1601_v60, %v1820_v10 }
 0x12e   : > { %v1605_v4 = vpop.eup %1604  ;;  %v1231_v6 = vmul.f32 %v1603_v0, %v1830_v12 }
 0x12f   : > { %v1210_v1 = vadd.f32 %v1209_v63, %v1199_v61  ;;  %v1219_v2 = vadd.f32 %v1601_v60, %v1208_v62  ;;  %v1607_v11 = vpop.eup %1606  ;;  %v1242_v14 = vmul.f32 %v1605_v4, %v1848_v16 }
 0x130   : > { %v1609_v15 = vpop.eup %1608  ;;  %v1253_v9 = vmul.f32 %v1607_v11, %v1856_v18 }
 0x131   : > { %v1221_v5 = vadd.f32 %v1220_v3, %v1210_v1  ;;  %v1230_v8 = vadd.f32 %v1603_v0, %v1219_v2  ;;  %v1611_v20 = vpop.eup %1610  ;;  %v1264_v23 = vmul.f32 %v1609_v15, %v1874_v22 }
 0x132   : > { %v1275_v12 = vmul.f32 %v1611_v20, %v1882_v24 }
 0x133   : > { %v1232_v13 = vadd.f32 %v1231_v6, %v1221_v5  ;;  %v1241_v7 = vadd.f32 %v1605_v4, %v1230_v8 }
 0x135   : > { %v1243_v17 = vadd.f32 %v1242_v14, %v1232_v13  ;;  %v1252_v19 = vadd.f32 %v1607_v11, %v1241_v7 }
 0x137   : > { %v1254_v21 = vadd.f32 %v1253_v9, %v1243_v17  ;;  %v1263_v10 = vadd.f32 %v1609_v15, %v1252_v19 }
 0x139   : > { %v1265_v25 = vadd.f32 %v1264_v23, %v1254_v21  ;;  %v1274_v26 = vadd.f32 %v1611_v20, %v1263_v10 }
 0x13b   : > { %v1276_v27 = vadd.f32 %v1275_v12, %v1265_v25  ;;  %1612 = vrcp.f32 %v1274_v26 }
 0x145   : > { %v1613_v16 = vpop.eup %1612 }
 0x146   : > { %v1278_v28 = vmul.f32 %v1613_v16, %v1274_v26 }
 0x148   : > { %v1279_v29 = vsub.f32 2.0, %v1278_v28 }
 0x14a   : > { %v1280_v18 = vmul.f32 %v1613_v16, %v1279_v29 }
 0x14c   : > { %v1281_v30 = vmul.f32 %v1280_v18, %v1276_v27 }
 0x14e   : > { %1282 = vst.msk [vmem:[%s265_s24] sm:$0xff] %vm1154_vm2, %v1281_v30 }
 0x14f   : > { %1627 = shalt.err (!%p1624_p5)
}
 0x150   : > { %s1628_s12 = scalar_lea.hbm %s1957_s7, 128  ;;  %s1632_s15 = scalar_lea.hbm %s2010_s5, 256 }
 0x151   : > { %p1629_p6 = scmp.ne.s32.totalorder %s1957_s7, %s1628_s12  ;;  %p1633_p10 = scmp.lt.u32.totalorder %s1957_s7, %s2010_s5 }
 0x152   : > { %p1634_p11 = scmp.lt.u32.totalorder %s1632_s15, %s1628_s12  ;;  %p1636_p13 = scmp.lt.u32.totalorder %s1628_s12, %s1957_s7 }
 0x153   : > { %p1630_p7 = pnand %p1629_p6, %p1766_p4 }
 0x154   : > { %p1635_p12 = por %p1634_p11, %p1633_p10 }
 0x155   : > { %p1631_p9 = pneg %p1630_p7 }
 0x156   : > { %p1637_p0 = por %p1636_p13, %p1635_p12 }
 0x158   : > { %p1638_p1 = pnand %p1637_p0, %p1631_p9 }
 0x15a   : > { %1641 = shalt.err (!%p1638_p1)
}
 0x15b   : > { %1536 = dma.vmem_to_hbm [thread:$0]  (%p1766_p4), %s1959_s27, 128, %s1957_s7, %s1284_s8  }
 0x15c PF: > { %p1542_p2 = scmp.ge.s32.totalorder %s1692_s23, 2  ;;  %s1310_s24 = sand.u32 1, %s1672_s18  }
 0x15d   : > { %s1311_s29 = scalar_lea.sflag [#allocation3], %s1310_s24 }
 0x15e   : > { %p1539_p3 = pnand %p1542_p2, %p1773_p8 }
 0x160   : > { %1667 = dma.done.wait (!%p1539_p3), %s1311_s29, 128  }
 0x161   : > { %1669 = vsyncadd (!%p1539_p3), %s1311_s29, 4294967168  ;;  %s18_s23 = sadd.s32 1, %s1692_s23   ;;  %s2013_s18 = smov %s1676_s19 }
 0x162   : > { %p15_p5 = scmp.ge.s32.totalorder %s18_s23, 4   ;;  %s2014_s19 = smov %s1680_s20 }
 0x163   : > { %s2015_s20 = smov %s1779_s6  ;;  %s2016_s21 = smov %s1688_s22 }
 0x164   : > { %s2017_s22 = smov %s2019_s26  ;;  %17 = sbr.rel (!%p15_p5) target bundleno = 4 (0x4), region = 97 }
 0x16b   :  { %1316 = vsyncpa [#allocation3], 1 }
 0x16c   :  { %1318 = vsyncpa [#allocation3 + $0x1], 1 }

</bundles_post_ra>
